<compile_context>
chip_gen: v7x
topology: tpu7x:2x2x1
jax: 0.10.0
libtpu: 0.0.40
codegen_flags: <defaults>
</compile_context>

<pallas_src>
import functools

import jax
import jax.numpy as jnp
from jax.experimental import pallas as pl
from jax.experimental.pallas import tpu as pltpu  # noqa: F401  (kept for TPU-specific tuning)


def _round8(n):
    return ((n + 7) // 8) * 8


# ------------------------------ weight packing (init-time) ------------------------------

# PyTorch gate order along the 4H axis is [i, f, g, o].  Packed layout groups gates by type
# across layers: [i_0..i_{L-1} | f_* | o_* | g_*] so sigmoid / tanh each hit one slice.
_GATE_SRC = {"i": 0, "f": 1, "g": 2, "o": 3}
_GATE_DST = {"i": 0, "f": 1, "o": 2, "g": 3}


def _scatter_gate_cols(mat_4h, layer, L, H):
    """(rows, 4H) in PyTorch [i,f,g,o] column order -> (rows, 4LH) at this layer's slots."""
    rows = mat_4h.shape[0]
    out = jnp.zeros((rows, 4 * L * H), jnp.float32)
    for g in ("i", "f", "g", "o"):
        s = _GATE_SRC[g] * H
        d = _GATE_DST[g] * L * H + layer * H
        out = out.at[:, d:d + H].set(mat_4h[:, s:s + H])
    return out


def _pack_weights(params, I, H, L):
    W = 4 * L * H
    LH = L * H
    O = params["out_w_t"].shape[1]
    layers = params["layers"]

    # Layer-0 input projection, scattered to the packed gate-column layout.
    w_in0 = _scatter_gate_cols(layers[0]["w_ih_t"], 0, L, H)            # (I, W)

    # Combined recurrence matrix: W_hh_l on the block diagonal, W_ih_{l+1} one block above.
    w_comb = jnp.zeros((LH, W), jnp.float32)
    b_comb = jnp.zeros((1, W), jnp.float32)
    for l, lp in enumerate(layers):
        w_comb = w_comb.at[l * H:(l + 1) * H, :].add(_scatter_gate_cols(lp["w_hh_t"], l, L, H))
        if l >= 1:
            w_comb = w_comb.at[(l - 1) * H:l * H, :].add(_scatter_gate_cols(lp["w_ih_t"], l, L, H))
        b_comb = b_comb + _scatter_gate_cols(lp["b"], l, L, H)

    # Linear head, zero-padded to W columns so it lives in the same blob.
    w_out_p = jnp.zeros((H, W), jnp.float32).at[:, :O].set(params["out_w_t"])
    b_out_p = jnp.zeros((1, W), jnp.float32).at[:, :O].set(params["out_b"])

    def pad_rows(a, rows):
        return jnp.pad(a, ((0, rows - a.shape[0]), (0, 0)))

    # 8-row-aligned sections -> sublane-aligned static slices inside the kernel.
    return jnp.concatenate(
        [
            pad_rows(w_in0, _round8(I)),
            pad_rows(w_comb, _round8(LH)),
            pad_rows(b_comb, 8),
            pad_rows(w_out_p, _round8(H)),
            pad_rows(b_out_p, 8),
        ],
        axis=0,
    )


# ----------------------------- fused wavefront forward kernel ---------------------------

def _wavefront_lstm_kernel(L, T, B, I, H, O, x_ref, w_ref, out_ref):
    """Fused multi-layer LSTM (wavefront schedule) + linear head, single invocation.

    x_ref:   (T*B, I)  time-major flattened input
    w_ref:   packed weight blob (see _pack_weights)
    out_ref: (B, O)
    """
    LH = L * H
    W = 4 * LH
    SIG = 3 * LH

    r_comb = _round8(I)
    r_bias = r_comb + _round8(LH)
    r_wout = r_bias + 8
    r_bout = r_wout + _round8(H)

    w_in0 = w_ref[0:I, :]                     # (I, W)
    w_comb = w_ref[r_comb:r_comb + LH, :]     # (LH, W)
    bias = w_ref[r_bias:r_bias + 1, :]        # (1, W)

    # Hoisted non-recurrent projection for the whole sequence: one batched matmul.
    proj = jnp.dot(x_ref[...], w_in0, preferred_element_type=jnp.float32)    # (T*B, W)

    # Hoisted broadcast (JAX does not CSE broadcast_in_dim inside the loop).
    bias_b = jnp.broadcast_to(bias, (B, W))

    # Wavefront state: column slice l*H:(l+1)*H holds layer l's most recent hidden/cell.
    h_state = jnp.zeros((B, LH), jnp.float32)
    c_state = jnp.zeros((B, LH), jnp.float32)

    # At step s, layer l processes timestep (s - l); T + L - 1 steps total.
    for s in range(T + L - 1):
        # ONE MXU op: recurrent (block diagonal) + inter-layer input (block above) for all layers.
        gates = jnp.dot(h_state, w_comb, preferred_element_type=jnp.float32) + bias_b
        if s < T:
            gates = gates + proj[s * B:(s + 1) * B, :]       # layer-0 input for t = s

        # One contiguous sigmoid region (i|f|o, all layers) and one tanh region (g, all layers).
        sig = jax.nn.sigmoid(gates[:, :SIG])
        g_all = jnp.tanh(gates[:, SIG:])
        i_all = sig[:, 0:LH]
        f_all = sig[:, LH:2 * LH]
        o_all = sig[:, 2 * LH:3 * LH]

        c_new = f_all * c_state + i_all * g_all              # all layers at once
        h_new = o_all * jnp.tanh(c_new)

        if s < L - 1:
            # Warm-up: layers s+1..L-1 have not consumed a real timestep yet; keep them zero.
            keep = (s + 1) * H
            tail = jnp.zeros((B, LH - keep), jnp.float32)
            c_state = jnp.concatenate([c_new[:, :keep], tail], axis=1)
            h_state = jnp.concatenate([h_new[:, :keep], tail], axis=1)
        else:
            # Drain-phase phantom updates of lower layers are never read by any active
            # layer or by the head, so no masking is needed here.
            c_state = c_new
            h_state = h_new

    # Linear head fused onto the top layer's final hidden state (t = T-1).
    h_last = h_state[:, (L - 1) * H:LH]                      # (B, H)
    w_out = w_ref[r_wout:r_wout + H, :]                      # (H, W); cols >= O are zero
    b_out = w_ref[r_bout:r_bout + 1, :]
    head = jnp.dot(h_last, w_out, preferred_element_type=jnp.float32) + b_out
    out_ref[...] = head[:, :O]


def rnn_forward(params, x_bti):
    """Equivalent of RNN.forward: x (B, T, I) -> (B, I)."""
    B, T, I = x_bti.shape
    L = len(params["layers"])
    H = params["layers"][0]["w_hh_t"].shape[0]
    O = params["out_w_t"].shape[1]

    # Time-major flatten in the wrapper so the kernel needs no reshapes.
    x_flat = jnp.transpose(x_bti, (1, 0, 2)).reshape(T * B, I).astype(jnp.float32)

    kernel = functools.partial(_wavefront_lstm_kernel, L, T, B, I, H, O)
    return pl.pallas_call(
        kernel,
        out_shape=jax.ShapeDtypeStruct((B, O), jnp.float32),
    )(x_flat, params["w_blob"])


# --------------------------------------- parameters -------------------------------------

def init_rnn_params(key, input_size, hidden_size, num_layers):
    """Deterministic init matching PyTorch shapes (uniform +-1/sqrt(H)); packs the kernel blob."""
    I, H, L = input_size, hidden_size, num_layers
    params = {"layers": []}
    k = 1.0 / jnp.sqrt(jnp.float32(H))
    for layer in range(L):
        in_dim = I if layer == 0 else H
        key, k1, k2, k3, k4 = jax.random.split(key, 5)
        w_ih = jax.random.uniform(k1, (4 * H, in_dim), jnp.float32, -k, k)
        w_hh = jax.random.uniform(k2, (4 * H, H), jnp.float32, -k, k)
        b_ih = jax.random.uniform(k3, (4 * H,), jnp.float32, -k, k)
        b_hh = jax.random.uniform(k4, (4 * H,), jnp.float32, -k, k)
        params["layers"].append(
            dict(
                w_ih_t=w_ih.T,                    # (in_dim, 4H), PyTorch gate order [i,f,g,o]
                w_hh_t=w_hh.T,                    # (H, 4H)
                b=(b_ih + b_hh).reshape(1, -1),   # (1, 4H)
            )
        )
    key, k5, k6 = jax.random.split(key, 3)
    w_out = jax.random.uniform(k5, (I, H), jnp.float32, -k, k)
    b_out = jax.random.uniform(k6, (I,), jnp.float32, -k, k)
    params["out_w_t"] = w_out.T                   # (H, I)
    params["out_b"] = b_out.reshape(1, -1)        # (1, I)

    # One-time pack of every weight/bias into a single kernel operand.
    params["w_blob"] = _pack_weights(params, I, H, L)
    return params


# ------------------------------------ pure-JAX reference --------------------------------

def rnn_forward_ref(params, x_bti):
    x = jnp.transpose(x_bti, (1, 0, 2)).astype(jnp.float32)  # (T, B, I)
    B = x.shape[1]
    for lp in params["layers"]:
        H = lp["w_hh_t"].shape[0]
        h0 = jnp.zeros((B, H), jnp.float32)
        c0 = jnp.zeros((B, H), jnp.float32)

        def step(carry, x_t, lp=lp, H=H):
            h, c = carry
            gates = x_t @ lp["w_ih_t"] + h @ lp["w_hh_t"] + lp["b"]
            i = jax.nn.sigmoid(gates[:, 0 * H:1 * H])
            f = jax.nn.sigmoid(gates[:, 1 * H:2 * H])
            g = jnp.tanh(gates[:, 2 * H:3 * H])
            o = jax.nn.sigmoid(gates[:, 3 * H:4 * H])
            c = f * c + i * g
            h = o * jnp.tanh(c)
            return (h, c), h

        _, hs = jax.lax.scan(step, (h0, c0), x)
        x = hs
    h_last = x[-1]
    return h_last @ params["out_w_t"] + params["out_b"]


# --------------------------------------------- main -------------------------------------

if __name__ == "__main__":
    input_size = 4
    hidden_size = 32
    num_layers = 2
    batch = 2
    seq_len = 8

    key = jax.random.PRNGKey(0)
    key, pkey, xkey = jax.random.split(key, 3)

    params = init_rnn_params(pkey, input_size, hidden_size, num_layers)
    x = jax.random.normal(xkey, (batch, seq_len, input_size), jnp.float32)

    out = jax.block_until_ready(rnn_forward(params, x))
    ref = jax.block_until_ready(rnn_forward_ref(params, x))

    assert out.shape == (batch, input_size)
    assert jnp.allclose(out, ref, atol=2e-5, rtol=2e-5), "kernel mismatch vs reference"

    print("KERNEL_OK")
</pallas_src>

<mosaic_0001>
module attributes {stable_mosaic.version = 11 : i64} {
  func.func @_wavefront_lstm_kernel(%arg0: memref<16x4xf32, #tpu.memory_space<vmem>>, %arg1: memref<120x256xf32, #tpu.memory_space<vmem>>, %arg2: memref<2x4xf32, #tpu.memory_space<vmem>>) attributes {dimension_semantics = [], scalar_prefetch = 0 : i64, scratch_operands = 0 : i64, tpu.core_type = #tpu.core_type<tc>} {
    %c0 = arith.constant 0 : index
    %c0_0 = arith.constant 0 : index
    %0 = vector.load %arg1[%c0, %c0_0] : memref<120x256xf32, #tpu.memory_space<vmem>>, vector<4x256xf32>
    %c8 = arith.constant 8 : index
    %c0_1 = arith.constant 0 : index
    %1 = vector.load %arg1[%c8, %c0_1] : memref<120x256xf32, #tpu.memory_space<vmem>>, vector<64x256xf32>
    %c72 = arith.constant 72 : index
    %c0_2 = arith.constant 0 : index
    %2 = vector.load %arg1[%c72, %c0_2] : memref<120x256xf32, #tpu.memory_space<vmem>>, vector<1x256xf32>
    %c0_3 = arith.constant 0 : index
    %c0_4 = arith.constant 0 : index
    %3 = vector.load %arg0[%c0_3, %c0_4] : memref<16x4xf32, #tpu.memory_space<vmem>>, vector<16x4xf32>
    %cst = arith.constant dense<0.000000e+00> : vector<16x256xf32>
    %4 = tpu.matmul %3, %0, %cst {dimension_numbers = #tpu.dot_dimension_numbers<[1], [0], [0], [1], [0, 0, 1, 1], [], []>} : vector<16x4xf32>, vector<4x256xf32>, vector<16x256xf32> -> vector<16x256xf32>
    %5 = vector.shape_cast %2 : vector<1x256xf32> to vector<1x256xf32>
    %6 = vector.broadcast %5 : vector<1x256xf32> to vector<2x256xf32>
    %cst_5 = arith.constant 0.000000e+00 : f32
    %7 = vector.broadcast %cst_5 : f32 to vector<2x64xf32>
    %cst_6 = arith.constant 0.000000e+00 : f32
    %8 = vector.broadcast %cst_6 : f32 to vector<2x64xf32>
    %cst_7 = arith.constant dense<0.000000e+00> : vector<2x256xf32>
    %9 = tpu.matmul %7, %1, %cst_7 {dimension_numbers = #tpu.dot_dimension_numbers<[1], [0], [0], [1], [0, 0, 1, 1], [], []>} : vector<2x64xf32>, vector<64x256xf32>, vector<2x256xf32> -> vector<2x256xf32>
    %10 = arith.addf %9, %6 : vector<2x256xf32>
    %11 = vector.extract_strided_slice %4 {offsets = [0, 0], sizes = [2, 256], strides = [1, 1]} : vector<16x256xf32> to vector<2x256xf32>
    %12 = arith.addf %10, %11 : vector<2x256xf32>
    %13 = vector.extract_strided_slice %12 {offsets = [0, 0], sizes = [2, 192], strides = [1, 1]} : vector<2x256xf32> to vector<2x192xf32>
    %14 = arith.negf %13 : vector<2x192xf32>
    %15 = math.exp %14 : vector<2x192xf32>
    %cst_8 = arith.constant 1.000000e+00 : f32
    %16 = vector.broadcast %cst_8 : f32 to vector<2x192xf32>
    %17 = arith.addf %16, %15 : vector<2x192xf32>
    %18 = arith.divf %16, %17 : vector<2x192xf32>
    %19 = vector.extract_strided_slice %12 {offsets = [0, 192], sizes = [2, 64], strides = [1, 1]} : vector<2x256xf32> to vector<2x64xf32>
    %20 = math.tanh %19 : vector<2x64xf32>
    %21 = vector.extract_strided_slice %18 {offsets = [0, 0], sizes = [2, 64], strides = [1, 1]} : vector<2x192xf32> to vector<2x64xf32>
    %22 = vector.extract_strided_slice %18 {offsets = [0, 64], sizes = [2, 64], strides = [1, 1]} : vector<2x192xf32> to vector<2x64xf32>
    %23 = vector.extract_strided_slice %18 {offsets = [0, 128], sizes = [2, 64], strides = [1, 1]} : vector<2x192xf32> to vector<2x64xf32>
    %24 = arith.mulf %22, %8 : vector<2x64xf32>
    %25 = arith.mulf %21, %20 : vector<2x64xf32>
    %26 = arith.addf %24, %25 : vector<2x64xf32>
    %27 = math.tanh %26 : vector<2x64xf32>
    %28 = arith.mulf %23, %27 : vector<2x64xf32>
    %cst_9 = arith.constant 0.000000e+00 : f32
    %29 = vector.broadcast %cst_9 : f32 to vector<2x32xf32>
    %30 = vector.extract_strided_slice %26 {offsets = [0, 0], sizes = [2, 32], strides = [1, 1]} : vector<2x64xf32> to vector<2x32xf32>
    %31 = tpu.concatenate %30, %29 in 1 : vector<2x32xf32>, vector<2x32xf32> -> vector<2x64xf32>
    %32 = vector.extract_strided_slice %28 {offsets = [0, 0], sizes = [2, 32], strides = [1, 1]} : vector<2x64xf32> to vector<2x32xf32>
    %33 = tpu.concatenate %32, %29 in 1 : vector<2x32xf32>, vector<2x32xf32> -> vector<2x64xf32>
    %cst_10 = arith.constant dense<0.000000e+00> : vector<2x256xf32>
    %34 = tpu.matmul %33, %1, %cst_10 {dimension_numbers = #tpu.dot_dimension_numbers<[1], [0], [0], [1], [0, 0, 1, 1], [], []>} : vector<2x64xf32>, vector<64x256xf32>, vector<2x256xf32> -> vector<2x256xf32>
    %35 = arith.addf %34, %6 : vector<2x256xf32>
    %36 = vector.extract_strided_slice %4 {offsets = [2, 0], sizes = [2, 256], strides = [1, 1]} : vector<16x256xf32> to vector<2x256xf32>
    %37 = arith.addf %35, %36 : vector<2x256xf32>
    %38 = vector.extract_strided_slice %37 {offsets = [0, 0], sizes = [2, 192], strides = [1, 1]} : vector<2x256xf32> to vector<2x192xf32>
    %39 = arith.negf %38 : vector<2x192xf32>
    %40 = math.exp %39 : vector<2x192xf32>
    %cst_11 = arith.constant 1.000000e+00 : f32
    %41 = vector.broadcast %cst_11 : f32 to vector<2x192xf32>
    %42 = arith.addf %41, %40 : vector<2x192xf32>
    %43 = arith.divf %41, %42 : vector<2x192xf32>
    %44 = vector.extract_strided_slice %37 {offsets = [0, 192], sizes = [2, 64], strides = [1, 1]} : vector<2x256xf32> to vector<2x64xf32>
    %45 = math.tanh %44 : vector<2x64xf32>
    %46 = vector.extract_strided_slice %43 {offsets = [0, 0], sizes = [2, 64], strides = [1, 1]} : vector<2x192xf32> to vector<2x64xf32>
    %47 = vector.extract_strided_slice %43 {offsets = [0, 64], sizes = [2, 64], strides = [1, 1]} : vector<2x192xf32> to vector<2x64xf32>
    %48 = vector.extract_strided_slice %43 {offsets = [0, 128], sizes = [2, 64], strides = [1, 1]} : vector<2x192xf32> to vector<2x64xf32>
    %49 = arith.mulf %47, %31 : vector<2x64xf32>
    %50 = arith.mulf %46, %45 : vector<2x64xf32>
    %51 = arith.addf %49, %50 : vector<2x64xf32>
    %52 = math.tanh %51 : vector<2x64xf32>
    %53 = arith.mulf %48, %52 : vector<2x64xf32>
    %cst_12 = arith.constant dense<0.000000e+00> : vector<2x256xf32>
    %54 = tpu.matmul %53, %1, %cst_12 {dimension_numbers = #tpu.dot_dimension_numbers<[1], [0], [0], [1], [0, 0, 1, 1], [], []>} : vector<2x64xf32>, vector<64x256xf32>, vector<2x256xf32> -> vector<2x256xf32>
    %55 = arith.addf %54, %6 : vector<2x256xf32>
    %56 = vector.extract_strided_slice %4 {offsets = [4, 0], sizes = [2, 256], strides = [1, 1]} : vector<16x256xf32> to vector<2x256xf32>
    %57 = arith.addf %55, %56 : vector<2x256xf32>
    %58 = vector.extract_strided_slice %57 {offsets = [0, 0], sizes = [2, 192], strides = [1, 1]} : vector<2x256xf32> to vector<2x192xf32>
    %59 = arith.negf %58 : vector<2x192xf32>
    %60 = math.exp %59 : vector<2x192xf32>
    %cst_13 = arith.constant 1.000000e+00 : f32
    %61 = vector.broadcast %cst_13 : f32 to vector<2x192xf32>
    %62 = arith.addf %61, %60 : vector<2x192xf32>
    %63 = arith.divf %61, %62 : vector<2x192xf32>
    %64 = vector.extract_strided_slice %57 {offsets = [0, 192], sizes = [2, 64], strides = [1, 1]} : vector<2x256xf32> to vector<2x64xf32>
    %65 = math.tanh %64 : vector<2x64xf32>
    %66 = vector.extract_strided_slice %63 {offsets = [0, 0], sizes = [2, 64], strides = [1, 1]} : vector<2x192xf32> to vector<2x64xf32>
    %67 = vector.extract_strided_slice %63 {offsets = [0, 64], sizes = [2, 64], strides = [1, 1]} : vector<2x192xf32> to vector<2x64xf32>
    %68 = vector.extract_strided_slice %63 {offsets = [0, 128], sizes = [2, 64], strides = [1, 1]} : vector<2x192xf32> to vector<2x64xf32>
    %69 = arith.mulf %67, %51 : vector<2x64xf32>
    %70 = arith.mulf %66, %65 : vector<2x64xf32>
    %71 = arith.addf %69, %70 : vector<2x64xf32>
    %72 = math.tanh %71 : vector<2x64xf32>
    %73 = arith.mulf %68, %72 : vector<2x64xf32>
    %cst_14 = arith.constant dense<0.000000e+00> : vector<2x256xf32>
    %74 = tpu.matmul %73, %1, %cst_14 {dimension_numbers = #tpu.dot_dimension_numbers<[1], [0], [0], [1], [0, 0, 1, 1], [], []>} : vector<2x64xf32>, vector<64x256xf32>, vector<2x256xf32> -> vector<2x256xf32>
    %75 = arith.addf %74, %6 : vector<2x256xf32>
    %76 = vector.extract_strided_slice %4 {offsets = [6, 0], sizes = [2, 256], strides = [1, 1]} : vector<16x256xf32> to vector<2x256xf32>
    %77 = arith.addf %75, %76 : vector<2x256xf32>
    %78 = vector.extract_strided_slice %77 {offsets = [0, 0], sizes = [2, 192], strides = [1, 1]} : vector<2x256xf32> to vector<2x192xf32>
    %79 = arith.negf %78 : vector<2x192xf32>
    %80 = math.exp %79 : vector<2x192xf32>
    %cst_15 = arith.constant 1.000000e+00 : f32
    %81 = vector.broadcast %cst_15 : f32 to vector<2x192xf32>
    %82 = arith.addf %81, %80 : vector<2x192xf32>
    %83 = arith.divf %81, %82 : vector<2x192xf32>
    %84 = vector.extract_strided_slice %77 {offsets = [0, 192], sizes = [2, 64], strides = [1, 1]} : vector<2x256xf32> to vector<2x64xf32>
    %85 = math.tanh %84 : vector<2x64xf32>
    %86 = vector.extract_strided_slice %83 {offsets = [0, 0], sizes = [2, 64], strides = [1, 1]} : vector<2x192xf32> to vector<2x64xf32>
    %87 = vector.extract_strided_slice %83 {offsets = [0, 64], sizes = [2, 64], strides = [1, 1]} : vector<2x192xf32> to vector<2x64xf32>
    %88 = vector.extract_strided_slice %83 {offsets = [0, 128], sizes = [2, 64], strides = [1, 1]} : vector<2x192xf32> to vector<2x64xf32>
    %89 = arith.mulf %87, %71 : vector<2x64xf32>
    %90 = arith.mulf %86, %85 : vector<2x64xf32>
    %91 = arith.addf %89, %90 : vector<2x64xf32>
    %92 = math.tanh %91 : vector<2x64xf32>
    %93 = arith.mulf %88, %92 : vector<2x64xf32>
    %cst_16 = arith.constant dense<0.000000e+00> : vector<2x256xf32>
    %94 = tpu.matmul %93, %1, %cst_16 {dimension_numbers = #tpu.dot_dimension_numbers<[1], [0], [0], [1], [0, 0, 1, 1], [], []>} : vector<2x64xf32>, vector<64x256xf32>, vector<2x256xf32> -> vector<2x256xf32>
    %95 = arith.addf %94, %6 : vector<2x256xf32>
    %96 = vector.extract_strided_slice %4 {offsets = [8, 0], sizes = [2, 256], strides = [1, 1]} : vector<16x256xf32> to vector<2x256xf32>
    %97 = arith.addf %95, %96 : vector<2x256xf32>
    %98 = vector.extract_strided_slice %97 {offsets = [0, 0], sizes = [2, 192], strides = [1, 1]} : vector<2x256xf32> to vector<2x192xf32>
    %99 = arith.negf %98 : vector<2x192xf32>
    %100 = math.exp %99 : vector<2x192xf32>
    %cst_17 = arith.constant 1.000000e+00 : f32
    %101 = vector.broadcast %cst_17 : f32 to vector<2x192xf32>
    %102 = arith.addf %101, %100 : vector<2x192xf32>
    %103 = arith.divf %101, %102 : vector<2x192xf32>
    %104 = vector.extract_strided_slice %97 {offsets = [0, 192], sizes = [2, 64], strides = [1, 1]} : vector<2x256xf32> to vector<2x64xf32>
    %105 = math.tanh %104 : vector<2x64xf32>
    %106 = vector.extract_strided_slice %103 {offsets = [0, 0], sizes = [2, 64], strides = [1, 1]} : vector<2x192xf32> to vector<2x64xf32>
    %107 = vector.extract_strided_slice %103 {offsets = [0, 64], sizes = [2, 64], strides = [1, 1]} : vector<2x192xf32> to vector<2x64xf32>
    %108 = vector.extract_strided_slice %103 {offsets = [0, 128], sizes = [2, 64], strides = [1, 1]} : vector<2x192xf32> to vector<2x64xf32>
    %109 = arith.mulf %107, %91 : vector<2x64xf32>
    %110 = arith.mulf %106, %105 : vector<2x64xf32>
    %111 = arith.addf %109, %110 : vector<2x64xf32>
    %112 = math.tanh %111 : vector<2x64xf32>
    %113 = arith.mulf %108, %112 : vector<2x64xf32>
    %cst_18 = arith.constant dense<0.000000e+00> : vector<2x256xf32>
    %114 = tpu.matmul %113, %1, %cst_18 {dimension_numbers = #tpu.dot_dimension_numbers<[1], [0], [0], [1], [0, 0, 1, 1], [], []>} : vector<2x64xf32>, vector<64x256xf32>, vector<2x256xf32> -> vector<2x256xf32>
    %115 = arith.addf %114, %6 : vector<2x256xf32>
    %116 = vector.extract_strided_slice %4 {offsets = [10, 0], sizes = [2, 256], strides = [1, 1]} : vector<16x256xf32> to vector<2x256xf32>
    %117 = arith.addf %115, %116 : vector<2x256xf32>
    %118 = vector.extract_strided_slice %117 {offsets = [0, 0], sizes = [2, 192], strides = [1, 1]} : vector<2x256xf32> to vector<2x192xf32>
    %119 = arith.negf %118 : vector<2x192xf32>
    %120 = math.exp %119 : vector<2x192xf32>
    %cst_19 = arith.constant 1.000000e+00 : f32
    %121 = vector.broadcast %cst_19 : f32 to vector<2x192xf32>
    %122 = arith.addf %121, %120 : vector<2x192xf32>
    %123 = arith.divf %121, %122 : vector<2x192xf32>
    %124 = vector.extract_strided_slice %117 {offsets = [0, 192], sizes = [2, 64], strides = [1, 1]} : vector<2x256xf32> to vector<2x64xf32>
    %125 = math.tanh %124 : vector<2x64xf32>
    %126 = vector.extract_strided_slice %123 {offsets = [0, 0], sizes = [2, 64], strides = [1, 1]} : vector<2x192xf32> to vector<2x64xf32>
    %127 = vector.extract_strided_slice %123 {offsets = [0, 64], sizes = [2, 64], strides = [1, 1]} : vector<2x192xf32> to vector<2x64xf32>
    %128 = vector.extract_strided_slice %123 {offsets = [0, 128], sizes = [2, 64], strides = [1, 1]} : vector<2x192xf32> to vector<2x64xf32>
    %129 = arith.mulf %127, %111 : vector<2x64xf32>
    %130 = arith.mulf %126, %125 : vector<2x64xf32>
    %131 = arith.addf %129, %130 : vector<2x64xf32>
    %132 = math.tanh %131 : vector<2x64xf32>
    %133 = arith.mulf %128, %132 : vector<2x64xf32>
    %cst_20 = arith.constant dense<0.000000e+00> : vector<2x256xf32>
    %134 = tpu.matmul %133, %1, %cst_20 {dimension_numbers = #tpu.dot_dimension_numbers<[1], [0], [0], [1], [0, 0, 1, 1], [], []>} : vector<2x64xf32>, vector<64x256xf32>, vector<2x256xf32> -> vector<2x256xf32>
    %135 = arith.addf %134, %6 : vector<2x256xf32>
    %136 = vector.extract_strided_slice %4 {offsets = [12, 0], sizes = [2, 256], strides = [1, 1]} : vector<16x256xf32> to vector<2x256xf32>
    %137 = arith.addf %135, %136 : vector<2x256xf32>
    %138 = vector.extract_strided_slice %137 {offsets = [0, 0], sizes = [2, 192], strides = [1, 1]} : vector<2x256xf32> to vector<2x192xf32>
    %139 = arith.negf %138 : vector<2x192xf32>
    %140 = math.exp %139 : vector<2x192xf32>
    %cst_21 = arith.constant 1.000000e+00 : f32
    %141 = vector.broadcast %cst_21 : f32 to vector<2x192xf32>
    %142 = arith.addf %141, %140 : vector<2x192xf32>
    %143 = arith.divf %141, %142 : vector<2x192xf32>
    %144 = vector.extract_strided_slice %137 {offsets = [0, 192], sizes = [2, 64], strides = [1, 1]} : vector<2x256xf32> to vector<2x64xf32>
    %145 = math.tanh %144 : vector<2x64xf32>
    %146 = vector.extract_strided_slice %143 {offsets = [0, 0], sizes = [2, 64], strides = [1, 1]} : vector<2x192xf32> to vector<2x64xf32>
    %147 = vector.extract_strided_slice %143 {offsets = [0, 64], sizes = [2, 64], strides = [1, 1]} : vector<2x192xf32> to vector<2x64xf32>
    %148 = vector.extract_strided_slice %143 {offsets = [0, 128], sizes = [2, 64], strides = [1, 1]} : vector<2x192xf32> to vector<2x64xf32>
    %149 = arith.mulf %147, %131 : vector<2x64xf32>
    %150 = arith.mulf %146, %145 : vector<2x64xf32>
    %151 = arith.addf %149, %150 : vector<2x64xf32>
    %152 = math.tanh %151 : vector<2x64xf32>
    %153 = arith.mulf %148, %152 : vector<2x64xf32>
    %cst_22 = arith.constant dense<0.000000e+00> : vector<2x256xf32>
    %154 = tpu.matmul %153, %1, %cst_22 {dimension_numbers = #tpu.dot_dimension_numbers<[1], [0], [0], [1], [0, 0, 1, 1], [], []>} : vector<2x64xf32>, vector<64x256xf32>, vector<2x256xf32> -> vector<2x256xf32>
    %155 = arith.addf %154, %6 : vector<2x256xf32>
    %156 = vector.extract_strided_slice %4 {offsets = [14, 0], sizes = [2, 256], strides = [1, 1]} : vector<16x256xf32> to vector<2x256xf32>
    %157 = arith.addf %155, %156 : vector<2x256xf32>
    %158 = vector.extract_strided_slice %157 {offsets = [0, 0], sizes = [2, 192], strides = [1, 1]} : vector<2x256xf32> to vector<2x192xf32>
    %159 = arith.negf %158 : vector<2x192xf32>
    %160 = math.exp %159 : vector<2x192xf32>
    %cst_23 = arith.constant 1.000000e+00 : f32
    %161 = vector.broadcast %cst_23 : f32 to vector<2x192xf32>
    %162 = arith.addf %161, %160 : vector<2x192xf32>
    %163 = arith.divf %161, %162 : vector<2x192xf32>
    %164 = vector.extract_strided_slice %157 {offsets = [0, 192], sizes = [2, 64], strides = [1, 1]} : vector<2x256xf32> to vector<2x64xf32>
    %165 = math.tanh %164 : vector<2x64xf32>
    %166 = vector.extract_strided_slice %163 {offsets = [0, 0], sizes = [2, 64], strides = [1, 1]} : vector<2x192xf32> to vector<2x64xf32>
    %167 = vector.extract_strided_slice %163 {offsets = [0, 64], sizes = [2, 64], strides = [1, 1]} : vector<2x192xf32> to vector<2x64xf32>
    %168 = vector.extract_strided_slice %163 {offsets = [0, 128], sizes = [2, 64], strides = [1, 1]} : vector<2x192xf32> to vector<2x64xf32>
    %169 = arith.mulf %167, %151 : vector<2x64xf32>
    %170 = arith.mulf %166, %165 : vector<2x64xf32>
    %171 = arith.addf %169, %170 : vector<2x64xf32>
    %172 = math.tanh %171 : vector<2x64xf32>
    %173 = arith.mulf %168, %172 : vector<2x64xf32>
    %cst_24 = arith.constant dense<0.000000e+00> : vector<2x256xf32>
    %174 = tpu.matmul %173, %1, %cst_24 {dimension_numbers = #tpu.dot_dimension_numbers<[1], [0], [0], [1], [0, 0, 1, 1], [], []>} : vector<2x64xf32>, vector<64x256xf32>, vector<2x256xf32> -> vector<2x256xf32>
    %175 = arith.addf %174, %6 : vector<2x256xf32>
    %176 = vector.extract_strided_slice %175 {offsets = [0, 0], sizes = [2, 192], strides = [1, 1]} : vector<2x256xf32> to vector<2x192xf32>
    %177 = arith.negf %176 : vector<2x192xf32>
    %178 = math.exp %177 : vector<2x192xf32>
    %cst_25 = arith.constant 1.000000e+00 : f32
    %179 = vector.broadcast %cst_25 : f32 to vector<2x192xf32>
    %180 = arith.addf %179, %178 : vector<2x192xf32>
    %181 = arith.divf %179, %180 : vector<2x192xf32>
    %182 = vector.extract_strided_slice %175 {offsets = [0, 192], sizes = [2, 64], strides = [1, 1]} : vector<2x256xf32> to vector<2x64xf32>
    %183 = math.tanh %182 : vector<2x64xf32>
    %184 = vector.extract_strided_slice %181 {offsets = [0, 0], sizes = [2, 64], strides = [1, 1]} : vector<2x192xf32> to vector<2x64xf32>
    %185 = vector.extract_strided_slice %181 {offsets = [0, 64], sizes = [2, 64], strides = [1, 1]} : vector<2x192xf32> to vector<2x64xf32>
    %186 = vector.extract_strided_slice %181 {offsets = [0, 128], sizes = [2, 64], strides = [1, 1]} : vector<2x192xf32> to vector<2x64xf32>
    %187 = arith.mulf %185, %171 : vector<2x64xf32>
    %188 = arith.mulf %184, %183 : vector<2x64xf32>
    %189 = arith.addf %187, %188 : vector<2x64xf32>
    %190 = math.tanh %189 : vector<2x64xf32>
    %191 = arith.mulf %186, %190 : vector<2x64xf32>
    %192 = vector.extract_strided_slice %191 {offsets = [0, 32], sizes = [2, 32], strides = [1, 1]} : vector<2x64xf32> to vector<2x32xf32>
    %c80 = arith.constant 80 : index
    %c0_26 = arith.constant 0 : index
    %193 = vector.load %arg1[%c80, %c0_26] : memref<120x256xf32, #tpu.memory_space<vmem>>, vector<32x256xf32>
    %c112 = arith.constant 112 : index
    %c0_27 = arith.constant 0 : index
    %194 = vector.load %arg1[%c112, %c0_27] : memref<120x256xf32, #tpu.memory_space<vmem>>, vector<1x256xf32>
    %cst_28 = arith.constant dense<0.000000e+00> : vector<2x256xf32>
    %195 = tpu.matmul %192, %193, %cst_28 {dimension_numbers = #tpu.dot_dimension_numbers<[1], [0], [0], [1], [0, 0, 1, 1], [], []>} : vector<2x32xf32>, vector<32x256xf32>, vector<2x256xf32> -> vector<2x256xf32>
    %196 = vector.broadcast %194 : vector<1x256xf32> to vector<2x256xf32>
    %197 = arith.addf %195, %196 : vector<2x256xf32>
    %198 = vector.extract_strided_slice %197 {offsets = [0, 0], sizes = [2, 4], strides = [1, 1]} : vector<2x256xf32> to vector<2x4xf32>
    %c0_29 = arith.constant 0 : index
    %c0_30 = arith.constant 0 : index
    %199 = vector.load %arg2[%c0_29, %c0_30] : memref<2x4xf32, #tpu.memory_space<vmem>>, vector<2x4xf32>
    tpu.vector_store %arg2[%c0_29, %c0_30], %198 {strides = array<i32>} : memref<2x4xf32, #tpu.memory_space<vmem>>, vector<2x4xf32>,
    return
  }
}

</mosaic_0001>

<bundles_post_ra>
// kernel: tpu_custom_call.1
= control target key start
LH: loop header
LB: loop body
LE: loop exit
PB: predicated region body
PF: predicated region fallthrough
CT: control target
= control target key end

     0   :  { %7 = vsyncpa [#allocation3], 0  ;;  %s1845_s0 = inlined_call_operand.vmem [shape: f32[16,4], index: 0, kind: input, shape index: {}]   ;;  %s1846_s1 = inlined_call_operand.hbm [shape: f32[120,256], index: 1, kind: input, shape index: {}]   ;;  %s1847_s2 = inlined_call_operand.hbm [shape: f32[2,4], index: 2, kind: output, shape index: {}]  }
   0x1   :  { %8 = vsyncpa [#allocation4], 0  ;;  %s1596_s9 = smov [#allocation2]   ;;  %s1548_s13 = scalar_lea.hbm %s1846_s1, 3840 }
   0x2   :  { %s16_s10 = sshll.u32 %s1596_s9, 4  ;;  %p1549_p0 = scmp.ne.s32.totalorder %s1846_s1, %s1548_s13  ;;  %s17_s10 = int_to_ptr.vmem [resolvable:$true] %s16_s10 }
   0x3   :  { %p1552_p1 = scmp.lt.u32.totalorder %s1548_s13, %s1846_s1 }
   0x5   :  { %p1554_p2 = pnand %p1552_p1, %p1549_p0 }
   0x7   :  { %1557 = shalt.err (!%p1554_p2)
}
   0x8   :  { %s1558_s18 = scalar_lea.vmem %s17_s10, 3840  ;;  %p1563_p4 = scmp.lt.s32.totalorder %s17_s10, %s17_s10 }
   0x9   :  { %p1559_p3 = scmp.ne.s32.totalorder %s17_s10, %s1558_s18  ;;  %p1564_p5 = scmp.lt.s32.totalorder %s1558_s18, %s1558_s18 }
   0xb   :  { %p1565_p6 = por %p1564_p5, %p1563_p4 }
   0xd   :  { %p1566_p7 = pnand %p1565_p6, %p1559_p3 }
   0xf   :  { %1569 = shalt.err (!%p1566_p7)
}
  0x10   :  { %s1597_s19 = smov 256   ;;  %s1598_s20 = smov 16  }
  0x11   :  { %22 = dma.hbm_to_vmem [thread:$0]  %s1846_s1, 3840, %s17_s10, [#allocation3], %s1597_s19, %s1597_s19, %s1598_s20  }
  0x12   :  { %1592 = dma.done.wait [#allocation3], 3840  }
  0x13   :  { %1593 = vsyncadd [#allocation3], 4294963456  ;;  %v1599_v0 = vmov 0.0   ;;  %v29_v1 = vld [vmem:[#allocation2 + $0x18] sm:$0xff]  ;;  %v31_v2 = vld [vmem:[#allocation2 + $0x28] sm:$0xff]  ;;  %vm55_vm0 = vcmask 1043456   ;;  %v140_v28 = vlaneseq }
  0x14   :  { %218 = vmatprep.mubr.f32.mxu1 %v1599_v0  ;;  %126 = vmatprep.mubr.f32.mxu0 %v1599_v0  ;;  %v28_v3 = vld [vmem:[#allocation2 + $0x10] sm:$0xff]  ;;  %v1632_v4 = vpack.c.bf16 %v31_v2, %v29_v1  ;;  %v30_v5 = vld [vmem:[#allocation2 + $0x20] sm:$0xff]  ;;  %v33_v6 = vld [vmem:[#allocation2 + $0x38] sm:$0xff]  ;;  %vm48_vm1 = vcmask 31744   ;;  %s1600_s24 = smov 64   ;;  %vm261_vm2 = vcmask 261120  }
  0x15   :  { %v35_v7 = vld [vmem:[#allocation2 + $0x48] sm:$0xff]  ;;  %v1634_v8 = vpack.c.bf16 %v30_v5, %v28_v3  ;;  %v32_v10 = vld [vmem:[#allocation2 + $0x30] sm:$0xff]  ;;  %v34_v11 = vld [vmem:[#allocation2 + $0x40] sm:$0xff]  ;;  %v1681_v29 = vshrl.u32 %v140_v28, 7  ;;  %vm150_vm3 = vcmask 523264   ;;  %s1602_s27 = smov [#allocation5]  }
  0x16   :  { %v1636_v9 = vpack.c.bf16 %v35_v7, %v33_v6  ;;  %v37_v12 = vld [vmem:[#allocation2 + $0x58] sm:$0xff]  ;;  %1282 = vmatprep.subr.bf16.mxu1 %v1632_v4  ;;  %v39_v13 = vld [vmem:[#allocation2 + $0x68] sm:$0xff]  ;;  %v1640_v14 = vpack.c.bf16 %v34_v11, %v32_v10  ;;  %v36_v15 = vld [vmem:[#allocation2 + $0x50] sm:$0xff]  ;;  %s1241_s28 = sshll.u32 %s1602_s27, 4  ;;  %vm1233_vm4 = vcmask 25600   ;;  %s1242_s28 = int_to_ptr.vmem [resolvable:$true] %s1241_s28 }
  0x17   :  { %1284 = vmatpush1.bf16.msra.mxu1 %v1634_v8  ;;  %v1643_v16 = vpack.c.bf16 %v39_v13, %v37_v12  ;;  %v38_v17 = vld [vmem:[#allocation2 + $0x60] sm:$0xff]  ;;  %v27_v18 = vld [vmem:[#allocation2 + $0x8] sm:$0xf]  ;;  %v41_v20 = vld [vmem:[#allocation2 + $0x78] sm:$0xff]  ;;  %v142_v32 = vsub.s32 0, %v1681_v29  ;;  %v146_v34 = vsub.s32 1, %v1681_v29  ;;  %p1575_p9 = scmp.lt.s32.totalorder %s1242_s28, %s1242_s28 }
  0x18   :  { %1286 = vmatprep.subr.bf16.mxu1 %v1636_v9  ;;  %v26_v19 = vld [vmem:[#allocation2] sm:$0xf]  ;;  %v43_v21 = vld [vmem:[#allocation2 + $0x88] sm:$0xff]  ;;  %1250 = vmatprep.subr.msk.mxu0 %vm55_vm0, %v27_v18  ;;  %v1649_v23 = vpack.c.bf16 %v38_v17, %v36_v15  ;;  %v40_v25 = vld [vmem:[#allocation2 + $0x70] sm:$0xff]  ;;  %s1570_s29 = scalar_lea.vmem %s1242_s28, 32 }
  0x19   :  { %v46_v22 = vld [vmem:[%s1845_s0] sm:$0xff]  ;;  %1251 = vmatpush1.msk.msra.mxu0 %vm55_vm0, %v26_v19  ;;  %v1653_v24 = vpack.c.bf16 %v43_v21, %v41_v20  ;;  %v45_v33 = vld [vmem:[#allocation2 + $0x90] ss:$8 sm:$0x3]  ;;  %v47_v50 = vld [vmem:[%s1845_s0 + $0x8] sm:$0xff]  ;;  %s1601_s0 = smov 96   ;;  %p1571_p8 = scmp.ne.s32.totalorder %s1242_s28, %s1570_s29 }
  0x1a   :  { %1252 = vmatmul.mubr.msk.f32.vlgmr.msra.gmra.mrb[0].mxu0 %vm48_vm1, %v46_v22  ;;  %v42_v26 = vld [vmem:[#allocation2 + $0x80] sm:$0xff]  ;;  %1298 = vmatprep.subr.bf16.mxu0 %v1632_v4  ;;  %v1691_v35 = vrot.slane %v45_v33, %v142_v32  ;;  %v1693_v36 = vrot.slane %v45_v33, %v146_v34  ;;  %p1576_p10 = scmp.lt.s32.totalorder %s1570_s29, %s1570_s29 }
  0x1b   :  { %1288 = vmatpush1.bf16.msra.mxu1 %v1640_v14  ;;  %1300 = vmatpush1.bf16.msra.mxu0 %v1634_v8  ;;  %v1660_v27 = vpack.c.bf16 %v42_v26, %v40_v25 }
  0x1c   :  { %1290 = vmatprep.subr.bf16.mxu1 %v1643_v16  ;;  %132 = vmatprep.mubr.f32.mxu0 %v1599_v0  ;;  %p1577_p11 = por %p1576_p10, %p1575_p9 }
  0x1d   :  { %1302 = vmatprep.subr.bf16.mxu0 %v1636_v9 }
  0x1e   :  { %1253 = vmatmul.mubr.msk.f32.gmra.mrb[2].mxu0 %vm48_vm1, %v47_v50  ;;  %p1578_p12 = pnand %p1577_p11, %p1571_p8 }
  0x1f   :  { %1292 = vmatpush1.bf16.msra.mxu1 %v1649_v23  ;;  %1304 = vmatpush1.bf16.msra.mxu0 %v1640_v14 }
  0x20   :  { %1294 = vmatprep.subr.bf16.mxu1 %v1653_v24  ;;  %1306 = vmatprep.subr.bf16.mxu0 %v1643_v16 }
  0x21   :  { %331 = vmatprep.mubr.f32.mxu0 %v1599_v0 }
  0x23   :  { %1296 = vmatpush1.bf16.msra.mxu1 %v1660_v27  ;;  %1308 = vmatpush1.bf16.msra.mxu0 %v1649_v23 }
  0x24   :  { %1314 = vmatprep.subr.bf16.mxu1 %v1632_v4  ;;  %1310 = vmatprep.subr.bf16.mxu0 %v1653_v24 }
  0x26   :  { %219 = vmatmul.mubr.f32.vlgmr.msra.gmra.mrb[0].mxu1 %v1599_v0 }
  0x27   :  { %1316 = vmatpush1.bf16.msra.mxu1 %v1634_v8  ;;  %447 = vmatprep.mubr.f32.mxu1 %v1599_v0 }
  0x28   :  { %1318 = vmatprep.subr.bf16.mxu1 %v1636_v9  ;;  %1312 = vmatpush1.bf16.msra.mxu0 %v1660_v27 }
  0x29   :  { %1330 = vmatprep.subr.bf16.mxu0 %v1632_v4 }
  0x2b   :  { %1320 = vmatpush1.bf16.msra.mxu1 %v1640_v14 }
  0x2c   :  { %1322 = vmatprep.subr.bf16.mxu1 %v1643_v16 }
  0x2f   :  { %1324 = vmatpush1.bf16.msra.mxu1 %v1649_v23 }
  0x30   :  { %1326 = vmatprep.subr.bf16.mxu1 %v1653_v24 }
  0x33   :  { %1328 = vmatpush1.bf16.msra.mxu1 %v1660_v27 }
  0x34   :  { %1346 = vmatprep.subr.bf16.mxu1 %v1632_v4 }
  0xed   :  { %v1683_v30 = vpop.f32.mrb[0].mxu0 }
  0xee   :  { %v1685_v31 = vpop.f32.mrb[1].mxu0  ;;  %v340_v6 = vrot.slane %v1683_v30, 2 }
  0xef   :  { %v341_v11 = vrot.slane %v1685_v31, 2 }
  0xf1   :  { %v1708_v58 = vpop.f32.mrb[2].mxu0 }
  0xf2   :  { %v1710_v59 = vpop.f32.mrb[3].mxu0 }
  0xf9   :  { %v220_v37 = vpop.f32.mrb[0].mxu1 }
  0xfa   :  { %v221_v38 = vadd.f32 %v220_v37, %v1691_v35  ;;  %v222_v39 = vpop.f32.mrb[1].mxu1 }
  0xfb   :  { %v223_v40 = vadd.f32 %v222_v39, %v1693_v36 }
  0xfc   :  { %v225_v41 = vadd.f32 %v221_v38, %v1683_v30 }
  0xfd   :  { %v226_v42 = vadd.f32 %v223_v40, %v1685_v31 }
  0xfe   :  { %v1254_v44 = vmul.f32 -1.442695, %v225_v41 }
  0xff   :  { %1440 = vtanh.f32 %v226_v42  ;;  %v1255_v55 = vmul.f32 -1.442695, %v226_v42 }
 0x100   :  { %1442 = vpow2.f32 %v1254_v44 }
 0x109   :  { %v1441_v43 = vpop.eup %1440 }
 0x10a   :  { %242 = vrot.lane.b32.xlu0 %v1441_v43, %s1600_s24  ;;  %v1443_v45 = vpop.eup %1442 }
 0x10b   :  { %v233_v46 = vadd.f32 1.0, %v1443_v45  ;;  %v454_v45 = vrot.slane %v1683_v30, 4 }
 0x10d   :  { %1444 = vrcp.f32 %v233_v46 }
 0x117   :  { %v1445_v47 = vpop.eup %1444 }
 0x118   :  { %v240_v51 = vmul.f32 0.0, %v1445_v47 }
 0x17c   :  { %v243_v48 = vpop.permute.xlu0 %242 }
 0x17d   :  { %v245_v49 = vmul.f32 %v1445_v47, %v243_v48  ;;  %v455_v48 = vrot.slane %v1685_v31, 4 }
 0x17f   :  { %247 = vrot.lane.b32.xlu0 %v245_v49, %s1600_s24 }
 0x1f1   :  { %v248_v52 = vpop.permute.xlu0 %247 }
 0x1f2   :  { %v250_v53 = vadd.f32 %v248_v52, %v240_v51 }
 0x1f4   :  { %1446 = vtanh.f32 %v250_v53 }
 0x1f5   :  { %1448 = vpow2.f32 %v1255_v55 }
 0x1fe   :  { %v1447_v54 = vpop.eup %1446 }
 0x1ff   :  { %253 = vrot.lane.b32.xlu1 %v1447_v54, %s1600_s24  ;;  %v1449_v56 = vpop.eup %1448 }
 0x200   :  { %v234_v57 = vadd.f32 1.0, %v1449_v56 }
 0x202   :  { %1450 = vrcp.f32 %v234_v57 }
 0x203   :  { %258 = vrot.lane.b32.xlu1 %v250_v53, %s1600_s24 }
 0x20c   :  { %v1451_v60 = vpop.eup %1450 }
 0x271   :  { %v254_v61 = vpop.permute.xlu1 %253 }
 0x272   :  { %v256_v62 = vmul.f32 %v1451_v60, %v254_v61 }
 0x274   :  { %v263_v63 = vsel %vm261_vm2, %v256_v62, 0.0 }
 0x275   :  { %v259_v1 = vpop.permute.xlu1 %258  ;;  %1256 = vmatmul.mubr.msk.f32.vlgmr.msra.gmra.mrb[4].mxu0 %vm150_vm3, %v263_v63 }
 0x276   :  { %v262_v2 = vsel %vm261_vm2, %v259_v1, 0.0  ;;  %1332 = vmatpush1.bf16.msra.mxu0 %v1634_v8  ;;  %557 = vmatprep.mubr.f32.mxu0 %v1599_v0 }
 0x277   :  { %360 = vrot.lane.b32.xlu1 %v262_v2, %s1600_s24  ;;  %1334 = vmatprep.subr.bf16.mxu0 %v1636_v9 }
 0x27a   :  { %1336 = vmatpush1.bf16.msra.mxu0 %v1640_v14 }
 0x27b   :  { %1338 = vmatprep.subr.bf16.mxu0 %v1643_v16 }
 0x27e   :  { %1340 = vmatpush1.bf16.msra.mxu0 %v1649_v23 }
 0x27f   :  { %1342 = vmatprep.subr.bf16.mxu0 %v1653_v24 }
 0x282   :  { %1344 = vmatpush1.bf16.msra.mxu0 %v1660_v27 }
 0x283   :  { %1362 = vmatprep.subr.bf16.mxu0 %v1632_v4 }
 0x2e9   :  { %v361_v25 = vpop.permute.xlu1 %360 }
 0x348   :  { %v333_v3 = vpop.f32.mrb[4].mxu0 }
 0x349   :  { %v334_v5 = vadd.f32 %v333_v3, %v1691_v35  ;;  %v335_v7 = vpop.f32.mrb[5].mxu0 }
 0x34a   :  { %v336_v10 = vadd.f32 %v335_v7, %v1693_v36 }
 0x34b   :  { %v344_v12 = vadd.f32 %v340_v6, %v334_v5 }
 0x34c   :  { %v345_v13 = vadd.f32 %v341_v11, %v336_v10 }
 0x34d   :  { %v1257_v17 = vmul.f32 -1.442695, %v344_v12  ;;  %v564_v12 = vrot.slane %v1683_v30, 6 }
 0x34e   :  { %1452 = vtanh.f32 %v345_v13  ;;  %v1258_v37 = vmul.f32 -1.442695, %v345_v13 }
 0x34f   :  { %1454 = vpow2.f32 %v1257_v17  ;;  %v565_v17 = vrot.slane %v1685_v31, 6 }
 0x358   :  { %v1453_v15 = vpop.eup %1452 }
 0x359   :  { %365 = vrot.lane.b32.xlu0 %v1453_v15, %s1600_s24  ;;  %v1455_v18 = vpop.eup %1454 }
 0x35a   :  { %v352_v19 = vadd.f32 1.0, %v1455_v18 }
 0x35c   :  { %1456 = vrcp.f32 %v352_v19 }
 0x366   :  { %v1457_v20 = vpop.eup %1456 }
 0x367   :  { %v363_v26 = vmul.f32 %v1457_v20, %v361_v25 }
 0x3cb   :  { %v366_v21 = vpop.permute.xlu0 %365 }
 0x3cc   :  { %v368_v22 = vmul.f32 %v1457_v20, %v366_v21 }
 0x3ce   :  { %370 = vrot.lane.b32.xlu0 %v368_v22, %s1600_s24 }
 0x440   :  { %v371_v28 = vpop.permute.xlu0 %370 }
 0x441   :  { %v373_v33 = vadd.f32 %v371_v28, %v363_v26 }
 0x443   :  { %1458 = vtanh.f32 %v373_v33 }
 0x444   :  { %1460 = vpow2.f32 %v1258_v37 }
 0x44d   :  { %v1459_v34 = vpop.eup %1458 }
 0x44e   :  { %376 = vrot.lane.b32.xlu1 %v1459_v34, %s1600_s24  ;;  %v1461_v38 = vpop.eup %1460 }
 0x44f   :  { %v353_v39 = vadd.f32 1.0, %v1461_v38 }
 0x451   :  { %1462 = vrcp.f32 %v353_v39 }
 0x45b   :  { %v1463_v40 = vpop.eup %1462 }
 0x4c0   :  { %v377_v41 = vpop.permute.xlu1 %376 }
 0x4c1   :  { %v379_v42 = vmul.f32 %v1463_v40, %v377_v41 }
 0x4c3   :  { %1259 = vmatmul.mubr.msk.f32.vlgmr.msra.gmra.mrb[2].mxu1 %vm150_vm3, %v379_v42 }
 0x4c4   :  { %1348 = vmatpush1.bf16.msra.mxu1 %v1634_v8  ;;  %667 = vmatprep.mubr.f32.mxu1 %v1599_v0 }
 0x4c5   :  { %1350 = vmatprep.subr.bf16.mxu1 %v1636_v9 }
 0x4c8   :  { %1352 = vmatpush1.bf16.msra.mxu1 %v1640_v14 }
 0x4c9   :  { %1354 = vmatprep.subr.bf16.mxu1 %v1643_v16 }
 0x4cc   :  { %1356 = vmatpush1.bf16.msra.mxu1 %v1649_v23 }
 0x4cd   :  { %1358 = vmatprep.subr.bf16.mxu1 %v1653_v24 }
 0x4d0   :  { %1360 = vmatpush1.bf16.msra.mxu1 %v1660_v27 }
 0x4d1   :  { %1378 = vmatprep.subr.bf16.mxu1 %v1632_v4 }
 0x596   :  { %v449_v43 = vpop.f32.mrb[2].mxu1 }
 0x597   :  { %v450_v44 = vadd.f32 %v449_v43, %v1691_v35  ;;  %v451_v46 = vpop.f32.mrb[3].mxu1 }
 0x598   :  { %v452_v47 = vadd.f32 %v451_v46, %v1693_v36 }
 0x599   :  { %v458_v49 = vadd.f32 %v454_v45, %v450_v44 }
 0x59a   :  { %v459_v50 = vadd.f32 %v455_v48, %v452_v47 }
 0x59b   :  { %v1260_v52 = vmul.f32 -1.442695, %v458_v49 }
 0x59c   :  { %1464 = vtanh.f32 %v459_v50  ;;  %v1261_v1 = vmul.f32 -1.442695, %v459_v50 }
 0x59d   :  { %1466 = vpow2.f32 %v1260_v52 }
 0x5a6   :  { %v1465_v51 = vpop.eup %1464 }
 0x5a7   :  { %475 = vrot.lane.b32.xlu0 %v1465_v51, %s1600_s24  ;;  %v1467_v53 = vpop.eup %1466 }
 0x5a8   :  { %v466_v54 = vadd.f32 1.0, %v1467_v53 }
 0x5aa   :  { %1468 = vrcp.f32 %v466_v54 }
 0x5b4   :  { %v1469_v55 = vpop.eup %1468 }
 0x5b5   :  { %v473_v60 = vmul.f32 %v1469_v55, %v373_v33 }
 0x619   :  { %v476_v56 = vpop.permute.xlu0 %475 }
 0x61a   :  { %v478_v57 = vmul.f32 %v1469_v55, %v476_v56 }
 0x61c   :  { %480 = vrot.lane.b32.xlu1 %v478_v57, %s1600_s24 }
 0x68e   :  { %v481_v61 = vpop.permute.xlu1 %480 }
 0x68f   :  { %v483_v62 = vadd.f32 %v481_v61, %v473_v60 }
 0x691   :  { %1470 = vtanh.f32 %v483_v62 }
 0x692   :  { %1472 = vpow2.f32 %v1261_v1 }
 0x69b   :  { %v1471_v63 = vpop.eup %1470 }
 0x69c   :  { %486 = vrot.lane.b32.xlu0 %v1471_v63, %s1600_s24  ;;  %v1473_v2 = vpop.eup %1472 }
 0x69d   :  { %v467_v3 = vadd.f32 1.0, %v1473_v2 }
 0x69f   :  { %1474 = vrcp.f32 %v467_v3 }
 0x6a9   :  { %v1475_v5 = vpop.eup %1474 }
 0x70e   :  { %v487_v6 = vpop.permute.xlu0 %486 }
 0x70f   :  { %v489_v7 = vmul.f32 %v1475_v5, %v487_v6 }
 0x711   :  { %1262 = vmatmul.mubr.msk.f32.vlgmr.msra.gmra.mrb[6].mxu0 %vm150_vm3, %v489_v7 }
 0x712   :  { %1364 = vmatpush1.bf16.msra.mxu0 %v1634_v8  ;;  %773 = vmatprep.mubr.f32.mxu0 %v1599_v0 }
 0x713   :  { %1366 = vmatprep.subr.bf16.mxu0 %v1636_v9 }
 0x716   :  { %1368 = vmatpush1.bf16.msra.mxu0 %v1640_v14 }
 0x717   :  { %1370 = vmatprep.subr.bf16.mxu0 %v1643_v16 }
 0x71a   :  { %1372 = vmatpush1.bf16.msra.mxu0 %v1649_v23 }
 0x71b   :  { %1374 = vmatprep.subr.bf16.mxu0 %v1653_v24 }
 0x71e   :  { %1376 = vmatpush1.bf16.msra.mxu0 %v1660_v27 }
 0x71f   :  { %1394 = vmatprep.subr.bf16.mxu0 %v1632_v4 }
 0x7e4   :  { %v559_v10 = vpop.f32.mrb[6].mxu0 }
 0x7e5   :  { %v560_v11 = vadd.f32 %v559_v10, %v1691_v35  ;;  %v561_v13 = vpop.f32.mrb[7].mxu0  ;;  %v782_v10 = vrot.slane %v1708_v58, 2 }
 0x7e6   :  { %v562_v15 = vadd.f32 %v561_v13, %v1693_v36  ;;  %v783_v13 = vrot.slane %v1710_v59, 2 }
 0x7e7   :  { %v568_v18 = vadd.f32 %v564_v12, %v560_v11 }
 0x7e8   :  { %v569_v19 = vadd.f32 %v565_v17, %v562_v15 }
 0x7e9   :  { %v1263_v21 = vmul.f32 -1.442695, %v568_v18 }
 0x7ea   :  { %1476 = vtanh.f32 %v569_v19  ;;  %v1264_v38 = vmul.f32 -1.442695, %v569_v19 }
 0x7eb   :  { %1478 = vpow2.f32 %v1263_v21 }
 0x7f4   :  { %v1477_v20 = vpop.eup %1476 }
 0x7f5   :  { %585 = vrot.lane.b32.xlu1 %v1477_v20, %s1600_s24  ;;  %v1479_v22 = vpop.eup %1478 }
 0x7f6   :  { %v576_v25 = vadd.f32 1.0, %v1479_v22 }
 0x7f8   :  { %1480 = vrcp.f32 %v576_v25 }
 0x802   :  { %v1481_v26 = vpop.eup %1480 }
 0x803   :  { %v583_v30 = vmul.f32 %v1481_v26, %v483_v62 }
 0x867   :  { %v586_v28 = vpop.permute.xlu1 %585 }
 0x868   :  { %v588_v33 = vmul.f32 %v1481_v26, %v586_v28 }
 0x86a   :  { %590 = vrot.lane.b32.xlu0 %v588_v33, %s1600_s24 }
 0x8dc   :  { %v591_v34 = vpop.permute.xlu0 %590 }
 0x8dd   :  { %v593_v37 = vadd.f32 %v591_v34, %v583_v30 }
 0x8df   :  { %1482 = vtanh.f32 %v593_v37 }
 0x8e0   :  { %1484 = vpow2.f32 %v1264_v38 }
 0x8e9   :  { %v1483_v31 = vpop.eup %1482 }
 0x8ea   :  { %596 = vrot.lane.b32.xlu1 %v1483_v31, %s1600_s24  ;;  %v1485_v39 = vpop.eup %1484 }
 0x8eb   :  { %v577_v40 = vadd.f32 1.0, %v1485_v39 }
 0x8ed   :  { %1486 = vrcp.f32 %v577_v40 }
 0x8f7   :  { %v1487_v41 = vpop.eup %1486 }
 0x95c   :  { %v597_v42 = vpop.permute.xlu1 %596 }
 0x95d   :  { %v599_v43 = vmul.f32 %v1487_v41, %v597_v42 }
 0x95f   :  { %1265 = vmatmul.mubr.msk.f32.vlgmr.msra.gmra.mrb[4].mxu1 %vm150_vm3, %v599_v43 }
 0x960   :  { %1380 = vmatpush1.bf16.msra.mxu1 %v1634_v8  ;;  %885 = vmatprep.mubr.f32.mxu1 %v1599_v0 }
 0x961   :  { %1382 = vmatprep.subr.bf16.mxu1 %v1636_v9 }
 0x964   :  { %1384 = vmatpush1.bf16.msra.mxu1 %v1640_v14 }
 0x965   :  { %1386 = vmatprep.subr.bf16.mxu1 %v1643_v16 }
 0x968   :  { %1388 = vmatpush1.bf16.msra.mxu1 %v1649_v23 }
 0x969   :  { %1390 = vmatprep.subr.bf16.mxu1 %v1653_v24 }
 0x96c   :  { %1392 = vmatpush1.bf16.msra.mxu1 %v1660_v27 }
 0x96d   :  { %1410 = vmatprep.subr.bf16.mxu1 %v1632_v4 }
 0xa32   :  { %v669_v44 = vpop.f32.mrb[4].mxu1 }
 0xa33   :  { %v670_v45 = vadd.f32 %v669_v44, %v1691_v35  ;;  %v671_v46 = vpop.f32.mrb[5].mxu1  ;;  %v892_v44 = vrot.slane %v1708_v58, 4 }
 0xa34   :  { %v672_v47 = vadd.f32 %v671_v46, %v1693_v36 }
 0xa35   :  { %v674_v48 = vadd.f32 %v670_v45, %v1708_v58 }
 0xa36   :  { %v675_v49 = vadd.f32 %v672_v47, %v1710_v59 }
 0xa37   :  { %v1266_v51 = vmul.f32 -1.442695, %v674_v48 }
 0xa38   :  { %1488 = vtanh.f32 %v675_v49  ;;  %v1267_v62 = vmul.f32 -1.442695, %v675_v49 }
 0xa39   :  { %1490 = vpow2.f32 %v1266_v51 }
 0xa42   :  { %v1489_v50 = vpop.eup %1488 }
 0xa43   :  { %691 = vrot.lane.b32.xlu0 %v1489_v50, %s1600_s24  ;;  %v1491_v52 = vpop.eup %1490 }
 0xa44   :  { %v682_v53 = vadd.f32 1.0, %v1491_v52 }
 0xa46   :  { %1492 = vrcp.f32 %v682_v53 }
 0xa50   :  { %v1493_v4 = vpop.eup %1492 }
 0xa51   :  { %v689_v56 = vmul.f32 %v1493_v4, %v593_v37 }
 0xab5   :  { %v692_v54 = vpop.permute.xlu0 %691 }
 0xab6   :  { %v694_v55 = vmul.f32 %v1493_v4, %v692_v54 }
 0xab8   :  { %696 = vrot.lane.b32.xlu1 %v694_v55, %s1600_s24 }
 0xb2a   :  { %v697_v57 = vpop.permute.xlu1 %696 }
 0xb2b   :  { %v699_v60 = vadd.f32 %v697_v57, %v689_v56 }
 0xb2d   :  { %1494 = vtanh.f32 %v699_v60 }
 0xb2e   :  { %1496 = vpow2.f32 %v1267_v62 }
 0xb37   :  { %v1495_v61 = vpop.eup %1494 }
 0xb38   :  { %702 = vrot.lane.b32.xlu0 %v1495_v61, %s1600_s24  ;;  %v1497_v63 = vpop.eup %1496 }
 0xb39   :  { %v683_v1 = vadd.f32 1.0, %v1497_v63  ;;  %v1002_v63 = vrot.slane %v1708_v58, 6 }
 0xb3b   :  { %1498 = vrcp.f32 %v683_v1 }
 0xb45   :  { %v1499_v2 = vpop.eup %1498 }
 0xbaa   :  { %v703_v3 = vpop.permute.xlu0 %702 }
 0xbab   :  { %v705_v5 = vmul.f32 %v1499_v2, %v703_v3  ;;  %v1003_v3 = vrot.slane %v1710_v59, 6 }
 0xbad   :  { %1268 = vmatmul.mubr.msk.f32.vlgmr.msra.gmra.mrb[8].mxu0 %vm150_vm3, %v705_v5 }
 0xbae   :  { %1396 = vmatpush1.bf16.msra.mxu0 %v1634_v8  ;;  %995 = vmatprep.mubr.f32.mxu0 %v1599_v0 }
 0xbaf   :  { %1398 = vmatprep.subr.bf16.mxu0 %v1636_v9 }
 0xbb2   :  { %1400 = vmatpush1.bf16.msra.mxu0 %v1640_v14 }
 0xbb3   :  { %1402 = vmatprep.subr.bf16.mxu0 %v1643_v16 }
 0xbb6   :  { %1404 = vmatpush1.bf16.msra.mxu0 %v1649_v23 }
 0xbb7   :  { %1406 = vmatprep.subr.bf16.mxu0 %v1653_v24 }
 0xbba   :  { %1408 = vmatpush1.bf16.msra.mxu0 %v1660_v27 }
 0xc80   :  { %v775_v6 = vpop.f32.mrb[8].mxu0 }
 0xc81   :  { %v776_v7 = vadd.f32 %v775_v6, %v1691_v35  ;;  %v777_v11 = vpop.f32.mrb[9].mxu0 }
 0xc82   :  { %v778_v12 = vadd.f32 %v777_v11, %v1693_v36 }
 0xc83   :  { %v786_v15 = vadd.f32 %v782_v10, %v776_v7 }
 0xc84   :  { %v787_v17 = vadd.f32 %v783_v13, %v778_v12 }
 0xc85   :  { %v1269_v19 = vmul.f32 -1.442695, %v786_v15 }
 0xc86   :  { %1500 = vtanh.f32 %v787_v17  ;;  %v1270_v37 = vmul.f32 -1.442695, %v787_v17 }
 0xc87   :  { %1502 = vpow2.f32 %v1269_v19 }
 0xc90   :  { %v1501_v18 = vpop.eup %1500 }
 0xc91   :  { %803 = vrot.lane.b32.xlu1 %v1501_v18, %s1600_s24  ;;  %v1503_v20 = vpop.eup %1502 }
 0xc92   :  { %v794_v21 = vadd.f32 1.0, %v1503_v20 }
 0xc94   :  { %1504 = vrcp.f32 %v794_v21 }
 0xc9e   :  { %v1505_v22 = vpop.eup %1504 }
 0xc9f   :  { %v801_v28 = vmul.f32 %v1505_v22, %v699_v60 }
 0xd03   :  { %v804_v25 = vpop.permute.xlu1 %803 }
 0xd04   :  { %v806_v26 = vmul.f32 %v1505_v22, %v804_v25 }
 0xd06   :  { %808 = vrot.lane.b32.xlu0 %v806_v26, %s1600_s24 }
 0xd78   :  { %v809_v33 = vpop.permute.xlu0 %808 }
 0xd79   :  { %v811_v30 = vadd.f32 %v809_v33, %v801_v28 }
 0xd7b   :  { %1506 = vtanh.f32 %v811_v30 }
 0xd7c   :  { %1508 = vpow2.f32 %v1270_v37 }
 0xd85   :  { %v1507_v34 = vpop.eup %1506 }
 0xd86   :  { %814 = vrot.lane.b32.xlu1 %v1507_v34, %s1600_s24  ;;  %v1509_v31 = vpop.eup %1508 }
 0xd87   :  { %v795_v38 = vadd.f32 1.0, %v1509_v31 }
 0xd89   :  { %1510 = vrcp.f32 %v795_v38 }
 0xd93   :  { %v1511_v39 = vpop.eup %1510 }
 0xdf8   :  { %v815_v40 = vpop.permute.xlu1 %814 }
 0xdf9   :  { %v817_v41 = vmul.f32 %v1511_v39, %v815_v40 }
 0xdfb   :  { %1271 = vmatmul.mubr.msk.f32.vlgmr.msra.gmra.mrb[6].mxu1 %vm150_vm3, %v817_v41 }
 0xdfc   :  { %1412 = vmatpush1.bf16.msra.mxu1 %v1634_v8  ;;  %1105 = vmatprep.mubr.f32.mxu1 %v1599_v0 }
 0xdfd   :  { %1414 = vmatprep.subr.bf16.mxu1 %v1636_v9  ;;  %v893_v9 = vrot.slane %v1710_v59, 4 }
 0xe00   :  { %1416 = vmatpush1.bf16.msra.mxu1 %v1640_v14 }
 0xe01   :  { %1418 = vmatprep.subr.bf16.mxu1 %v1643_v16 }
 0xe04   :  { %1420 = vmatpush1.bf16.msra.mxu1 %v1649_v23 }
 0xe05   :  { %1422 = vmatprep.subr.bf16.mxu1 %v1653_v24 }
 0xe08   :  { %1424 = vmatpush1.bf16.msra.mxu1 %v1660_v27 }
 0xece   :  { %v887_v42 = vpop.f32.mrb[6].mxu1 }
 0xecf   :  { %v888_v43 = vadd.f32 %v887_v42, %v1691_v35  ;;  %v889_v8 = vpop.f32.mrb[7].mxu1 }
 0xed0   :  { %v890_v45 = vadd.f32 %v889_v8, %v1693_v36 }
 0xed1   :  { %v896_v46 = vadd.f32 %v892_v44, %v888_v43 }
 0xed2   :  { %v897_v14 = vadd.f32 %v893_v9, %v890_v45  ;;  %v1145_v45 = vld [vmem:[#allocation2 + $0xb8] sm:$0xff]  ;;  %v1142_v9 = vld [vmem:[#allocation2 + $0xa0] sm:$0xff] }
 0xed3   :  { %v1272_v23 = vmul.f32 -1.442695, %v896_v46 }
 0xed4   :  { %1512 = vtanh.f32 %v897_v14  ;;  %v1273_v4 = vmul.f32 -1.442695, %v897_v14  ;;  %v1144_v14 = vld [vmem:[#allocation2 + $0xb0] sm:$0xff] }
 0xed5   :  { %1514 = vpow2.f32 %v1272_v23  ;;  %v1427_v23 = vpack.c.bf16 %v1144_v14, %v1142_v9 }
 0xede   :  { %v1513_v16 = vpop.eup %1512 }
 0xedf   :  { %913 = vrot.lane.b32.xlu0 %v1513_v16, %s1600_s24  ;;  %v1515_v24 = vpop.eup %1514  ;;  %v1149_v16 = vld [vmem:[#allocation2 + $0xd8] sm:$0xff] }
 0xee0   :  { %v904_v27 = vadd.f32 1.0, %v1515_v24 }
 0xee2   :  { %1516 = vrcp.f32 %v904_v27  ;;  %v1146_v27 = vld [vmem:[#allocation2 + $0xc0] sm:$0xff] }
 0xeec   :  { %v1517_v47 = vpop.eup %1516 }
 0xeed   :  { %v911_v50 = vmul.f32 %v1517_v47, %v811_v30 }
 0xf51   :  { %v914_v48 = vpop.permute.xlu0 %913 }
 0xf52   :  { %v916_v49 = vmul.f32 %v1517_v47, %v914_v48  ;;  %v1148_v47 = vld [vmem:[#allocation2 + $0xd0] sm:$0xff] }
 0xf53   :  { %v1431_v48 = vpack.c.bf16 %v1148_v47, %v1146_v27 }
 0xf54   :  { %918 = vrot.lane.b32.xlu1 %v916_v49, %s1600_s24 }
 0xfc6   :  { %v919_v51 = vpop.permute.xlu1 %918 }
 0xfc7   :  { %v921_v52 = vadd.f32 %v919_v51, %v911_v50 }
 0xfc9   :  { %1518 = vtanh.f32 %v921_v52 }
 0xfca   :  { %1520 = vpow2.f32 %v1273_v4 }
 0xfd3   :  { %v1519_v53 = vpop.eup %1518 }
 0xfd4   :  { %924 = vrot.lane.b32.xlu0 %v1519_v53, %s1600_s24  ;;  %v1521_v54 = vpop.eup %1520 }
 0xfd5   :  { %v905_v55 = vadd.f32 1.0, %v1521_v54 }
 0xfd7   :  { %1522 = vrcp.f32 %v905_v55 }
 0xfe1   :  { %v1523_v56 = vpop.eup %1522 }
0x1046   :  { %v925_v57 = vpop.permute.xlu0 %924 }
0x1047   :  { %v927_v60 = vmul.f32 %v1523_v56, %v925_v57  ;;  %v1151_v56 = vld [vmem:[#allocation2 + $0xe0] ss:$8 sm:$0x3] }
0x1048   :  { %v1156_v57 = vrot.slane %v1151_v56, %v142_v32 }
0x1049   :  { %1274 = vmatmul.mubr.msk.f32.vlgmr.msra.gmra.mrb[10].mxu0 %vm150_vm3, %v927_v60 }
0x104a   :  { %1227 = vmatprep.mubr.f32.mxu0 %v1599_v0 }
0x111c   :  { %v997_v61 = vpop.f32.mrb[10].mxu0 }
0x111d   :  { %v998_v62 = vadd.f32 %v997_v61, %v1691_v35  ;;  %v999_v1 = vpop.f32.mrb[11].mxu0 }
0x111e   :  { %v1000_v2 = vadd.f32 %v999_v1, %v1693_v36 }
0x111f   :  { %v1006_v5 = vadd.f32 %v1002_v63, %v998_v62 }
0x1120   :  { %v1007_v6 = vadd.f32 %v1003_v3, %v1000_v2 }
0x1121   :  { %v1275_v10 = vmul.f32 -1.442695, %v1006_v5 }
0x1122   :  { %1524 = vtanh.f32 %v1007_v6  ;;  %v1276_v19 = vmul.f32 -1.442695, %v1007_v6 }
0x1123   :  { %1526 = vpow2.f32 %v1275_v10 }
0x112c   :  { %v1525_v7 = vpop.eup %1524 }
0x112d   :  { %1023 = vrot.lane.b32.xlu1 %v1525_v7, %s1600_s24  ;;  %v1527_v11 = vpop.eup %1526 }
0x112e   :  { %v1014_v0 = vadd.f32 1.0, %v1527_v11 }
0x1130   :  { %1528 = vrcp.f32 %v1014_v0 }
0x113a   :  { %v1529_v12 = vpop.eup %1528 }
0x113b   :  { %v1021_v58 = vmul.f32 %v1529_v12, %v921_v52 }
0x119f   :  { %v1024_v13 = vpop.permute.xlu1 %1023 }
0x11a0   :  { %v1026_v15 = vmul.f32 %v1529_v12, %v1024_v13 }
0x11a2   :  { %1028 = vrot.lane.b32.xlu0 %v1026_v15, %s1600_s24 }
0x1214   :  { %v1029_v17 = vpop.permute.xlu0 %1028 }
0x1215   :  { %v1031_v18 = vadd.f32 %v1029_v17, %v1021_v58 }
0x1217   :  { %1530 = vtanh.f32 %v1031_v18 }
0x1218   :  { %1532 = vpow2.f32 %v1276_v19 }
0x1221   :  { %v1531_v59 = vpop.eup %1530 }
0x1222   :  { %1034 = vrot.lane.b32.xlu1 %v1531_v59, %s1600_s24  ;;  %v1533_v20 = vpop.eup %1532 }
0x1223   :  { %v1015_v21 = vadd.f32 1.0, %v1533_v20 }
0x1225   :  { %1534 = vrcp.f32 %v1015_v21 }
0x122f   :  { %v1535_v22 = vpop.eup %1534 }
0x1294   :  { %v1035_v25 = vpop.permute.xlu1 %1034 }
0x1295   :  { %v1037_v26 = vmul.f32 %v1535_v22, %v1035_v25 }
0x1297   :  { %1277 = vmatmul.mubr.msk.f32.vlgmr.msra.gmra.mrb[8].mxu1 %vm150_vm3, %v1037_v26 }
0x136a   :  { %v1107_v28 = vpop.f32.mrb[8].mxu1 }
0x136b   :  { %v1109_v33 = vpop.f32.mrb[9].mxu1  ;;  %v1108_v37 = vadd.f32 %v1107_v28, %v1691_v35  ;;  %v1147_v35 = vld [vmem:[#allocation2 + $0xc8] sm:$0xff] }
0x136c   :  { %v1110_v30 = vadd.f32 %v1109_v33, %v1693_v36  ;;  %v1143_v36 = vld [vmem:[#allocation2 + $0xa8] sm:$0xff]  ;;  %v1429_v24 = vpack.c.bf16 %v1149_v16, %v1147_v35 }
0x136d   :  { %v1278_v31 = vmul.f32 -1.442695, %v1108_v37  ;;  %v1425_v46 = vpack.c.bf16 %v1145_v45, %v1143_v36 }
0x136e   :  { %1536 = vtanh.f32 %v1110_v30  ;;  %v1279_v50 = vmul.f32 -1.442695, %v1110_v30 }
0x136f   :  { %1538 = vpow2.f32 %v1278_v31  ;;  %1426 = vmatprep.subr.bf16.mxu0 %v1425_v46 }
0x1370   :  { %1428 = vmatpush1.bf16.msra.mxu0 %v1427_v23 }
0x1371   :  { %1430 = vmatprep.subr.bf16.mxu0 %v1429_v24 }
0x1374   :  { %1432 = vmatpush1.bf16.msra.mxu0 %v1431_v48 }
0x1378   :  { %v1537_v34 = vpop.eup %1536 }
0x1379   :  { %1127 = vrot.lane.b32.xlu0 %v1537_v34, %s1600_s24  ;;  %v1539_v38 = vpop.eup %1538 }
0x137a   :  { %v1118_v39 = vadd.f32 1.0, %v1539_v38 }
0x137c   :  { %1540 = vrcp.f32 %v1118_v39 }
0x1386   :  { %v1541_v40 = vpop.eup %1540 }
0x1387   :  { %v1125_v43 = vmul.f32 %v1541_v40, %v1031_v18 }
0x13eb   :  { %v1128_v41 = vpop.permute.xlu0 %1127 }
0x13ec   :  { %v1130_v42 = vmul.f32 %v1541_v40, %v1128_v41 }
0x13ee   :  { %1132 = vrot.lane.b32.xlu1 %v1130_v42, %s1600_s24 }
0x1460   :  { %v1133_v44 = vpop.permute.xlu1 %1132 }
0x1461   :  { %v1135_v8 = vadd.f32 %v1133_v44, %v1125_v43 }
0x1463   :  { %1542 = vtanh.f32 %v1135_v8 }
0x1464   :  { %1544 = vpow2.f32 %v1279_v50 }
0x146d   :  { %v1543_v49 = vpop.eup %1542 }
0x146e   :  { %1138 = vrot.lane.b32.xlu0 %v1543_v49, %s1600_s24  ;;  %v1545_v51 = vpop.eup %1544 }
0x146f   :  { %v1119_v52 = vadd.f32 1.0, %v1545_v51 }
0x1471   :  { %1546 = vrcp.f32 %v1119_v52 }
0x147b   :  { %v1547_v53 = vpop.eup %1546 }
0x14e0   :  { %v1139_v4 = vpop.permute.xlu0 %1138 }
0x14e1   :  { %v1141_v54 = vmul.f32 %v1547_v53, %v1139_v4 }
0x14e3   :  { %1159 = vrot.lane.b32.xlu1 %v1141_v54, %s1601_s0 }
0x1555   :  { %v1160_v55 = vpop.permute.xlu1 %1159 }
0x1556   :  { %1280 = vmatmul.mubr.msk.f32.vlgmr.msra.gmra.mrb[12].mxu0 %vm261_vm2, %v1160_v55 }
0x1629   :  { %v1229_v60 = vpop.f32.mrb[12].mxu0 }
0x162a   :  { %v1230_v61 = vadd.f32 %v1229_v60, %v1156_v57  ;;  %v1231_v62 = vpop.f32.mrb[13].mxu0 }
0x162c   :  { %1234 = vst.msk [vmem:[#allocation5] sm:$0x3] %vm1233_vm4, %v1230_v61 }
0x162d   :  { %1581 = shalt.err (!%p1578_p12)
}
0x162e   :  { %s1582_s4 = scalar_lea.hbm %s1847_s2, 32 }
0x162f   :  { %p1583_p13 = scmp.ne.s32.totalorder %s1847_s2, %s1582_s4  ;;  %p1586_p0 = scmp.lt.u32.totalorder %s1582_s4, %s1847_s2 }
0x1631   :  { %p1588_p1 = pnand %p1586_p0, %p1583_p13 }
0x1633   :  { %1591 = shalt.err (!%p1588_p1)
}
0x1634   :  { %1244 = dma.vmem_to_hbm [thread:$0]  %s1242_s28, 32, %s1847_s2, [#allocation4]  }
0x1635   :  { %1594 = dma.done.wait [#allocation4], 32  }
0x1636   :  { %1595 = vsyncadd [#allocation4], 4294967264 }
0x1637   :  { %1248 = vsyncpa [#allocation3], 1 }
0x1638   :  { %1249 = vsyncpa [#allocation4], 1 }

</bundles_post_ra>
